<compile_context>
chip_gen: v6e
topology: v6e:2x2x1
jax: 0.10.0
libtpu: 0.0.40
codegen_flags: <defaults>
</compile_context>

<pallas_src>
import functools
import math

import jax
import jax.numpy as jnp
from jax import lax
from jax.experimental import pallas as pl
from jax.experimental.pallas import tpu as pltpu

# Budget chosen for the smallest-VMEM generation (v7x: 64 MiB physical).
_VMEM_LIMIT = 48 * 1024 * 1024


# ---------------------------------------------------------------------------
# in-kernel helpers
# ---------------------------------------------------------------------------
def _rmsnorm(x, w, eps=1e-6):
    # x: (rows, D) f32, w: (1, D) f32
    var = jnp.mean(x * x, axis=-1, keepdims=True)
    return x * lax.rsqrt(var + eps) * w


# ---------------------------------------------------------------------------
# K1: fused RMSNorm + QKV projection + RoPE
# ---------------------------------------------------------------------------
def qkv_rope_kernel(x_ref, nw_ref, w_ref, cos_ref, sinp_ref, sinm_ref, o_ref, *, half):
    xn = _rmsnorm(x_ref[...], nw_ref[...]).astype(jnp.bfloat16)
    y = jnp.dot(xn, w_ref[...], preferred_element_type=jnp.float32)     # (tm, tn) f32
    # rotate-half via two full-width shifted copies; cross-head / wrap contamination is
    # multiplied by 0 in the masked sin tables.  (pltpu.roll would be the XLU micro-opt.)
    y_r = jnp.concatenate([y[:, -half:], y[:, :-half]], axis=-1)        # y[c - half]
    y_l = jnp.concatenate([y[:, half:], y[:, :half]], axis=-1)          # y[c + half]
    o_ref[...] = y * cos_ref[...] + y_r * sinp_ref[...] + y_l * sinm_ref[...]


def qkv_rope(x2, norm_w, wqkv, cos_f, sin_p, sin_m, *, head_dim, tm):
    R, D = x2.shape
    Ntot = wqkv.shape[1]
    # Column tile: must be head-aligned and a multiple of 128 (or the full width).
    tn = Ntot
    kernel = functools.partial(qkv_rope_kernel, half=head_dim // 2)
    return pl.pallas_call(
        kernel,
        out_shape=jax.ShapeDtypeStruct((R, Ntot), jnp.float32),
        grid=(R // tm, Ntot // tn),
        in_specs=[
            pl.BlockSpec((tm, D), lambda i, j: (i, 0)),       # x rows (revisited over j)
            pl.BlockSpec((1, D), lambda i, j: (0, 0)),        # attn_norm weight
            pl.BlockSpec((D, tn), lambda i, j: (0, j)),       # fused [Wq|Wk|Wv] (bf16)
            pl.BlockSpec((tm, tn), lambda i, j: (i, j)),      # cos table
            pl.BlockSpec((tm, tn), lambda i, j: (i, j)),      # +sin (upper half) table
            pl.BlockSpec((tm, tn), lambda i, j: (i, j)),      # -sin (lower half) table
        ],
        out_specs=pl.BlockSpec((tm, tn), lambda i, j: (i, j)),
        compiler_params=pltpu.CompilerParams(
            dimension_semantics=("parallel", "parallel"),
            vmem_limit_bytes=_VMEM_LIMIT),
    )(x2, norm_w, wqkv, cos_f, sin_p, sin_m)


# ---------------------------------------------------------------------------
# K2: causal GQA attention + output projection + residual
# ---------------------------------------------------------------------------
def attention_kernel(q_ref, kv_ref, x_ref, wo_ref, o_ref, *,
                     n_heads, n_kv_heads, head_dim):
    qi = pl.program_id(1)
    d_q = n_heads * head_dim
    d_kv = n_kv_heads * head_dim
    n_rep = n_heads // n_kv_heads
    scale = 1.0 / math.sqrt(head_dim)

    q_all = q_ref[0][:, :d_q].astype(jnp.bfloat16)            # (tq, Hq*hd), already RoPE'd
    kv_full = kv_ref[0]                                       # (S, Ntot)
    k_all = kv_full[:, d_q:d_q + d_kv].astype(jnp.bfloat16)   # (S, Hkv*hd), RoPE'd
    v_all = kv_full[:, d_q + d_kv:].astype(jnp.bfloat16)      # (S, Hkv*hd)
    x = x_ref[0]                                              # (tq, D) residual, f32
    wo = wo_ref[...]                                          # (Hq*hd, D) bf16
    tq = q_all.shape[0]
    seq = kv_full.shape[0]

    # causal mask with absolute row offsets; hoisted out of the head loop.
    row = qi * tq + lax.broadcasted_iota(jnp.int32, (tq, seq), 0)
    col = lax.broadcasted_iota(jnp.int32, (tq, seq), 1)
    causal = col <= row
    neg_inf = jnp.float32(float("-inf"))

    acc = jnp.zeros((tq, x.shape[-1]), jnp.float32)
    for h in range(n_heads):                                  # static unroll over heads
        kvh = h // n_rep
        qh = q_all[:, h * head_dim:(h + 1) * head_dim]
        kh = k_all[:, kvh * head_dim:(kvh + 1) * head_dim]
        vh = v_all[:, kvh * head_dim:(kvh + 1) * head_dim]
        s = lax.dot_general(qh, kh, (((1,), (1,)), ((), ())),
                            preferred_element_type=jnp.float32) * scale
        s = jnp.where(causal, s, neg_inf)
        m = jnp.max(s, axis=-1, keepdims=True)
        e = jnp.exp(s - m)
        p = e * pl.reciprocal(jnp.sum(e, axis=-1, keepdims=True), approx=True)
        o_h = jnp.dot(p.astype(jnp.bfloat16), vh, preferred_element_type=jnp.float32)
        # accumulate the output projection per head -> no (tq, Hq*hd) concat
        acc = acc + jnp.dot(o_h.astype(jnp.bfloat16),
                            wo[h * head_dim:(h + 1) * head_dim, :],
                            preferred_element_type=jnp.float32)
    # TODO(synk): attention-weight dropout (training mode) not implemented.
    o_ref[0] = x + acc


def attention(qkv3, x3, wo, *, n_heads, n_kv_heads, head_dim, tq):
    B, S, Ntot = qkv3.shape
    D = x3.shape[-1]
    d_q = n_heads * head_dim
    kernel = functools.partial(attention_kernel, n_heads=n_heads,
                               n_kv_heads=n_kv_heads, head_dim=head_dim)
    # TODO(synk): for long S, tile KV with an online-softmax (flash-style) reduction axis
    #             instead of loading the full (S, Ntot) K/V block per q tile.
    return pl.pallas_call(
        kernel,
        out_shape=jax.ShapeDtypeStruct((B, S, D), jnp.float32),
        grid=(B, S // tq),
        in_specs=[
            pl.BlockSpec((1, tq, Ntot), lambda b, qi: (b, qi, 0)),   # q tile (rope'd qkv)
            pl.BlockSpec((1, S, Ntot), lambda b, qi: (b, 0, 0)),     # full K/V (revisited)
            pl.BlockSpec((1, tq, D), lambda b, qi: (b, qi, 0)),      # residual x tile
            pl.BlockSpec((d_q, D), lambda b, qi: (0, 0)),            # wo (bf16)
        ],
        out_specs=pl.BlockSpec((1, tq, D), lambda b, qi: (b, qi, 0)),
        compiler_params=pltpu.CompilerParams(
            dimension_semantics=("parallel", "parallel"),
            vmem_limit_bytes=_VMEM_LIMIT),
    )(qkv3, qkv3, x3, wo)


# ---------------------------------------------------------------------------
# K3: RMSNorm + SwiGLU FFN + residual, hidden dim F tiled as a reduction axis
# ---------------------------------------------------------------------------
def ffn_kernel(x_ref, nw_ref, w1_ref, w3_ref, w2_ref, o_ref, hn_ref, acc_ref):
    f = pl.program_id(1)

    @pl.when(f == 0)
    def _():
        hn_ref[...] = _rmsnorm(x_ref[...], nw_ref[...])       # compute norm once per row tile
        acc_ref[...] = jnp.zeros_like(acc_ref)

    hn = hn_ref[...].astype(jnp.bfloat16)
    a = jnp.dot(hn, w1_ref[...], preferred_element_type=jnp.float32)   # (tm, tf)
    b = jnp.dot(hn, w3_ref[...], preferred_element_type=jnp.float32)   # (tm, tf)
    g = a * jax.nn.sigmoid(a)                                          # SiLU in f32
    acc_ref[...] += jnp.dot((g * b).astype(jnp.bfloat16), w2_ref[...],
                            preferred_element_type=jnp.float32)

    @pl.when(f == pl.num_programs(1) - 1)
    def _():
        o_ref[...] = x_ref[...] + acc_ref[...]


def swiglu_ffn(x2, norm_w, w1, w3, w2, *, tm, tf):
    R, D = x2.shape
    F = w1.shape[1]
    return pl.pallas_call(
        ffn_kernel,
        out_shape=jax.ShapeDtypeStruct((R, D), jnp.float32),
        grid=(R // tm, F // tf),
        in_specs=[
            pl.BlockSpec((tm, D), lambda i, f: (i, 0)),       # x rows (revisited over f)
            pl.BlockSpec((1, D), lambda i, f: (0, 0)),        # ffn_norm weight
            pl.BlockSpec((D, tf), lambda i, f: (0, f)),       # w1 column tile (bf16)
            pl.BlockSpec((D, tf), lambda i, f: (0, f)),       # w3 column tile (bf16)
            pl.BlockSpec((tf, D), lambda i, f: (f, 0)),       # w2 row tile    (bf16)
        ],
        out_specs=pl.BlockSpec((tm, D), lambda i, f: (i, 0)),
        scratch_shapes=[pltpu.VMEM((tm, D), jnp.float32),     # hn
                        pltpu.VMEM((tm, D), jnp.float32)],    # acc
        compiler_params=pltpu.CompilerParams(
            dimension_semantics=("parallel", "arbitrary"),
            vmem_limit_bytes=_VMEM_LIMIT),
    )(x2, norm_w, w1, w3, w2)


# ---------------------------------------------------------------------------
# K4: final RMSNorm + tied lm_head (vocab-tiled, no host-side transpose)
# ---------------------------------------------------------------------------
def lm_head_kernel(x_ref, nw_ref, emb_ref, o_ref):
    xn = _rmsnorm(x_ref[...], nw_ref[...]).astype(jnp.bfloat16)
    # contract over D against emb stored as (V, D) -> logits tile (tm, tv)
    o_ref[...] = lax.dot_general(xn, emb_ref[...], (((1,), (1,)), ((), ())),
                                 preferred_element_type=jnp.float32)


def lm_head(x2, norm_w, emb, *, tm, tv):
    R, D = x2.shape
    V = emb.shape[0]
    return pl.pallas_call(
        lm_head_kernel,
        out_shape=jax.ShapeDtypeStruct((R, V), jnp.float32),
        grid=(R // tm, V // tv),
        in_specs=[
            pl.BlockSpec((tm, D), lambda i, j: (i, 0)),
            pl.BlockSpec((1, D), lambda i, j: (0, 0)),
            pl.BlockSpec((tv, D), lambda i, j: (j, 0)),       # emb vocab tile (bf16)
        ],
        out_specs=pl.BlockSpec((tm, tv), lambda i, j: (i, j)),
        compiler_params=pltpu.CompilerParams(
            dimension_semantics=("parallel", "parallel"),
            vmem_limit_bytes=_VMEM_LIMIT),
    )(x2, norm_w, emb)


# ---------------------------------------------------------------------------
# host-side glue: RoPE tables, params, forward
# ---------------------------------------------------------------------------
def build_rope_tables(seq_len, head_dim, n_heads, n_kv_heads, base=10000.0):
    """Full-width (S, Dq+2*Dkv) RoPE tables for the fused [q|k|v] projection.

    cos_f : cos for q/k columns, 1 for v columns
    sin_p : +sin on the upper half of each head chunk (multiplies the right-shifted copy)
    sin_m : -sin on the lower half of each head chunk (multiplies the left-shifted copy)
    """
    half = head_dim // 2
    inv_freq = 1.0 / (base ** (jnp.arange(0, head_dim, 2, dtype=jnp.float32) / head_dim))
    t = jnp.arange(seq_len, dtype=jnp.float32)
    freqs = jnp.einsum("i,j->ij", t, inv_freq)
    emb = jnp.concatenate((freqs, freqs), axis=-1)            # (S, head_dim)
    cos, sin = jnp.cos(emb), jnp.sin(emb)
    hi = (jnp.arange(head_dim) >= half).astype(jnp.float32)[None, :]
    lo = 1.0 - hi
    n_qk = n_heads + n_kv_heads
    d_v = n_kv_heads * head_dim
    cos_f = jnp.concatenate([jnp.tile(cos, (1, n_qk)),
                             jnp.ones((seq_len, d_v), jnp.float32)], axis=-1)
    sin_p = jnp.concatenate([jnp.tile(sin * hi, (1, n_qk)),
                             jnp.zeros((seq_len, d_v), jnp.float32)], axis=-1)
    sin_m = jnp.concatenate([jnp.tile(-sin * lo, (1, n_qk)),
                             jnp.zeros((seq_len, d_v), jnp.float32)], axis=-1)
    return cos_f, sin_p, sin_m


def init_params(key, *, n_layers, vocab_size, d_model, n_heads, n_kv_heads,
                head_dim, ffn_dim):
    std = 0.02
    d_q = n_heads * head_dim
    d_kv = n_kv_heads * head_dim
    keys = jax.random.split(key, 1 + 7 * n_layers)
    emb = (jax.random.normal(keys[0], (vocab_size, d_model), jnp.float32) * std
           ).astype(jnp.bfloat16)                             # tied embedding / lm_head (bf16)
    layers = []
    for i in range(n_layers):
        k = keys[1 + 7 * i: 1 + 7 * (i + 1)]
        wq = jax.random.normal(k[0], (d_model, d_q), jnp.float32) * std
        wk = jax.random.normal(k[1], (d_model, d_kv), jnp.float32) * std
        wv = jax.random.normal(k[2], (d_model, d_kv), jnp.float32) * std
        layers.append(dict(
            attn_norm=jnp.ones((1, d_model), jnp.float32),
            ffn_norm=jnp.ones((1, d_model), jnp.float32),
            wqkv=jnp.concatenate([wq, wk, wv], axis=1).astype(jnp.bfloat16),
            wo=(jax.random.normal(k[3], (d_q, d_model), jnp.float32) * std).astype(jnp.bfloat16),
            w1=(jax.random.normal(k[4], (d_model, ffn_dim), jnp.float32) * std).astype(jnp.bfloat16),
            w2=(jax.random.normal(k[5], (ffn_dim, d_model), jnp.float32) * std).astype(jnp.bfloat16),
            w3=(jax.random.normal(k[6], (d_model, ffn_dim), jnp.float32) * std).astype(jnp.bfloat16),
        ))
    final_norm = jnp.ones((1, d_model), jnp.float32)
    return emb, layers, final_norm


def modern_transformer_forward(input_ids, emb, layers, final_norm, *,
                               n_heads, n_kv_heads, head_dim,
                               tm=8, tq=8, tf=128, tv=128):
    B, S = input_ids.shape
    V, D = emb.shape
    x = emb[input_ids].astype(jnp.float32)                    # embedding gather (glue), f32 stream
    # dropout(p=0.1) -> identity (eval mode).
    cos_s, sinp_s, sinm_s = build_rope_tables(S, head_dim, n_heads, n_kv_heads)
    # Replicate tables over the batch-folded row axis.  (With tm | S this could instead be
    # indexed as (i % (S // tm), j) in the BlockSpec index_map to avoid the replication.)
    cos_f = jnp.tile(cos_s, (B, 1))
    sin_p = jnp.tile(sinp_s, (B, 1))
    sin_m = jnp.tile(sinm_s, (B, 1))

    x2 = x.reshape(B * S, D)
    for p in layers:
        qkv = qkv_rope(x2, p["attn_norm"], p["wqkv"], cos_f, sin_p, sin_m,
                       head_dim=head_dim, tm=tm)
        h3 = attention(qkv.reshape(B, S, -1), x2.reshape(B, S, D), p["wo"],
                       n_heads=n_heads, n_kv_heads=n_kv_heads,
                       head_dim=head_dim, tq=tq)
        x2 = swiglu_ffn(h3.reshape(B * S, D), p["ffn_norm"],
                        p["w1"], p["w3"], p["w2"], tm=tm, tf=tf)
    logits = lm_head(x2, final_norm, emb, tm=tm, tv=tv)       # tied weights, no emb.T on host
    return logits.reshape(B, S, V)
    # TODO(synk): optional attention_mask and labels->cross-entropy loss paths not implemented.


# ---------------------------------------------------------------------------
# pure-JAX reference (f32, same bf16-quantized weights) for a sanity check
# ---------------------------------------------------------------------------
def ref_forward(input_ids, emb, layers, final_norm, *, n_heads, n_kv_heads, head_dim):
    def rms(x, w):
        return x * lax.rsqrt(jnp.mean(x * x, axis=-1, keepdims=True) + 1e-6) * w

    def rot(x):
        h = x.shape[-1] // 2
        return jnp.concatenate((-x[..., h:], x[..., :h]), axis=-1)

    B, S = input_ids.shape
    d_q = n_heads * head_dim
    d_kv = n_kv_heads * head_dim
    n_rep = n_heads // n_kv_heads
    emb_f = emb.astype(jnp.float32)
    x = emb_f[input_ids]
    inv_freq = 1.0 / (10000.0 ** (jnp.arange(0, head_dim, 2, dtype=jnp.float32) / head_dim))
    t = jnp.arange(S, dtype=jnp.float32)
    freqs = jnp.einsum("i,j->ij", t, inv_freq)
    e = jnp.concatenate((freqs, freqs), axis=-1)
    cos, sin = jnp.cos(e), jnp.sin(e)
    causal = jnp.tril(jnp.ones((S, S), bool))
    for p in layers:
        wqkv = p["wqkv"].astype(jnp.float32)
        wq, wk, wv = wqkv[:, :d_q], wqkv[:, d_q:d_q + d_kv], wqkv[:, d_q + d_kv:]
        xn = rms(x, p["attn_norm"][0])
        q = (xn @ wq).reshape(B, S, n_heads, head_dim).transpose(0, 2, 1, 3)
        k = (xn @ wk).reshape(B, S, n_kv_heads, head_dim).transpose(0, 2, 1, 3)
        v = (xn @ wv).reshape(B, S, n_kv_heads, head_dim).transpose(0, 2, 1, 3)
        c4, s4 = cos[None, None], sin[None, None]
        q = q * c4 + rot(q) * s4
        k = k * c4 + rot(k) * s4
        k = jnp.repeat(k, n_rep, axis=1)
        v = jnp.repeat(v, n_rep, axis=1)
        sc = jnp.einsum("bhqd,bhkd->bhqk", q, k) / math.sqrt(head_dim)
        sc = jnp.where(causal, sc, -jnp.inf)
        a = jax.nn.softmax(sc, axis=-1)
        o = jnp.einsum("bhqk,bhkd->bhqd", a, v).transpose(0, 2, 1, 3).reshape(B, S, -1)
        x = x + o @ p["wo"].astype(jnp.float32)
        hn = rms(x, p["ffn_norm"][0])
        x = x + (jax.nn.silu(hn @ p["w1"].astype(jnp.float32))
                 * (hn @ p["w3"].astype(jnp.float32))) @ p["w2"].astype(jnp.float32)
    return rms(x, final_norm[0]) @ emb_f.T


# ---------------------------------------------------------------------------
if __name__ == "__main__":
    B, S = 2, 16
    vocab_size = 256
    d_model = 32
    n_layers = 2
    n_heads = 4
    n_kv_heads = 2
    head_dim = d_model // n_heads
    ffn_dim = ((int(8 * d_model / 3) + 255) // 256) * 256     # = 256 (same rule as PyTorch)

    key = jax.random.PRNGKey(0)
    k_params, k_ids = jax.random.split(key)
    emb, layers, final_norm = init_params(
        k_params, n_layers=n_layers, vocab_size=vocab_size, d_model=d_model,
        n_heads=n_heads, n_kv_heads=n_kv_heads, head_dim=head_dim, ffn_dim=ffn_dim)

    input_ids = jax.random.randint(k_ids, (B, S), 0, vocab_size, dtype=jnp.int32)

    logits = modern_transformer_forward(
        input_ids, emb, layers, final_norm,
        n_heads=n_heads, n_kv_heads=n_kv_heads, head_dim=head_dim,
        tm=8, tq=8, tf=128, tv=128)
    logits = jax.block_until_ready(logits)
    assert logits.shape == (B, S, vocab_size), logits.shape

    ref = jax.block_until_ready(
        ref_forward(input_ids, emb, layers, final_norm,
                    n_heads=n_heads, n_kv_heads=n_kv_heads, head_dim=head_dim))
    max_err = float(jnp.max(jnp.abs(logits - ref)))
    assert max_err < 2e-2, f"mismatch vs reference: {max_err}"

    print("KERNEL_OK")
</pallas_src>

<mosaic_0001>
module attributes {stable_mosaic.version = 11 : i64} {
  func.func @qkv_rope_kernel(%arg0: i32, %arg1: i32, %arg2: memref<8x32xf32, #tpu.memory_space<vmem>>, %arg3: memref<1x32xf32, #tpu.memory_space<vmem>>, %arg4: memref<32x64xbf16, #tpu.memory_space<vmem>>, %arg5: memref<8x64xf32, #tpu.memory_space<vmem>>, %arg6: memref<8x64xf32, #tpu.memory_space<vmem>>, %arg7: memref<8x64xf32, #tpu.memory_space<vmem>>, %arg8: memref<8x64xf32, #tpu.memory_space<vmem>>) attributes {dimension_semantics = [#tpu.dimension_semantics<parallel>, #tpu.dimension_semantics<parallel>], iteration_bounds = array<i64: 4, 1>, scalar_prefetch = 0 : i64, scratch_operands = 0 : i64, tpu.core_type = #tpu.core_type<tc>, window_params = [{transform_indices = @transform_0, window_bounds = array<i64: 8, 32>}, {pipeline_mode = #tpu.pipeline_mode<synchronous>, transform_indices = @transform_1, window_bounds = array<i64: 1, 32>}, {transform_indices = @transform_2, window_bounds = array<i64: 32, 64>}, {transform_indices = @transform_3, window_bounds = array<i64: 8, 64>}, {transform_indices = @transform_4, window_bounds = array<i64: 8, 64>}, {transform_indices = @transform_5, window_bounds = array<i64: 8, 64>}, {transform_indices = @transform_6, window_bounds = array<i64: 8, 64>}]} {
    %c0 = arith.constant 0 : index
    %c0_0 = arith.constant 0 : index
    %0 = vector.load %arg2[%c0, %c0_0] : memref<8x32xf32, #tpu.memory_space<vmem>>, vector<8x32xf32>
    %c0_1 = arith.constant 0 : index
    %c0_2 = arith.constant 0 : index
    %1 = vector.load %arg3[%c0_1, %c0_2] : memref<1x32xf32, #tpu.memory_space<vmem>>, vector<1x32xf32>
    %2 = arith.mulf %0, %0 : vector<8x32xf32>
    %cst = arith.constant dense<0.000000e+00> : vector<8xf32>
    %3 = vector.multi_reduction <add>, %2, %cst [1] : vector<8x32xf32> to vector<8xf32>
    %4 = vector.shape_cast %3 : vector<8xf32> to vector<8x1xf32>
    %cst_3 = arith.constant 3.200000e+01 : f32
    %5 = vector.broadcast %cst_3 : f32 to vector<8x1xf32>
    %6 = arith.divf %4, %5 : vector<8x1xf32>
    %cst_4 = arith.constant 9.99999997E-7 : f32
    %7 = vector.broadcast %cst_4 : f32 to vector<8x1xf32>
    %8 = arith.addf %6, %7 : vector<8x1xf32>
    %9 = math.rsqrt %8 : vector<8x1xf32>
    %10 = vector.broadcast %9 : vector<8x1xf32> to vector<8x32xf32>
    %11 = arith.mulf %0, %10 : vector<8x32xf32>
    %12 = vector.broadcast %1 : vector<1x32xf32> to vector<8x32xf32>
    %13 = arith.mulf %11, %12 : vector<8x32xf32>
    %14 = arith.truncf %13 : vector<8x32xf32> to vector<8x32xbf16>
    %c0_5 = arith.constant 0 : index
    %c0_6 = arith.constant 0 : index
    %15 = vector.load %arg4[%c0_5, %c0_6] : memref<32x64xbf16, #tpu.memory_space<vmem>>, vector<32x64xbf16>
    %cst_7 = arith.constant dense<0.000000e+00> : vector<8x64xf32>
    %16 = tpu.matmul %14, %15, %cst_7 {dimension_numbers = #tpu.dot_dimension_numbers<[1], [0], [0], [1], [0, 0, 1, 1], [], []>} : vector<8x32xbf16>, vector<32x64xbf16>, vector<8x64xf32> -> vector<8x64xf32>
    %17 = vector.extract_strided_slice %16 {offsets = [0, 60], sizes = [8, 4], strides = [1, 1]} : vector<8x64xf32> to vector<8x4xf32>
    %18 = vector.extract_strided_slice %16 {offsets = [0, 0], sizes = [8, 60], strides = [1, 1]} : vector<8x64xf32> to vector<8x60xf32>
    %19 = tpu.concatenate %17, %18 in 1 : vector<8x4xf32>, vector<8x60xf32> -> vector<8x64xf32>
    %20 = vector.extract_strided_slice %16 {offsets = [0, 4], sizes = [8, 60], strides = [1, 1]} : vector<8x64xf32> to vector<8x60xf32>
    %21 = vector.extract_strided_slice %16 {offsets = [0, 0], sizes = [8, 4], strides = [1, 1]} : vector<8x64xf32> to vector<8x4xf32>
    %22 = tpu.concatenate %20, %21 in 1 : vector<8x60xf32>, vector<8x4xf32> -> vector<8x64xf32>
    %c0_8 = arith.constant 0 : index
    %c0_9 = arith.constant 0 : index
    %23 = vector.load %arg5[%c0_8, %c0_9] : memref<8x64xf32, #tpu.memory_space<vmem>>, vector<8x64xf32>
    %24 = arith.mulf %16, %23 : vector<8x64xf32>
    %c0_10 = arith.constant 0 : index
    %c0_11 = arith.constant 0 : index
    %25 = vector.load %arg6[%c0_10, %c0_11] : memref<8x64xf32, #tpu.memory_space<vmem>>, vector<8x64xf32>
    %26 = arith.mulf %19, %25 : vector<8x64xf32>
    %27 = arith.addf %24, %26 : vector<8x64xf32>
    %c0_12 = arith.constant 0 : index
    %c0_13 = arith.constant 0 : index
    %28 = vector.load %arg7[%c0_12, %c0_13] : memref<8x64xf32, #tpu.memory_space<vmem>>, vector<8x64xf32>
    %29 = arith.mulf %22, %28 : vector<8x64xf32>
    %30 = arith.addf %27, %29 : vector<8x64xf32>
    %c0_14 = arith.constant 0 : index
    %c0_15 = arith.constant 0 : index
    %31 = vector.load %arg8[%c0_14, %c0_15] : memref<8x64xf32, #tpu.memory_space<vmem>>, vector<8x64xf32>
    tpu.vector_store %arg8[%c0_14, %c0_15], %30 {strides = array<i32>} : memref<8x64xf32, #tpu.memory_space<vmem>>, vector<8x64xf32>,
    return
  }
  func.func @transform_0(%arg0: i32, %arg1: i32) -> (i32, i32) {
    %c0_i32 = arith.constant 0 : i32
    %c0_i32_0 = arith.constant 0 : i32
    return %arg0, %c0_i32 : i32, i32
  }
  func.func @transform_1(%arg0: i32, %arg1: i32) -> (i32, i32) {
    %c0_i32 = arith.constant 0 : i32
    %c0_i32_0 = arith.constant 0 : i32
    %c0_i32_1 = arith.constant 0 : i32
    return %c0_i32, %c0_i32_0 : i32, i32
  }
  func.func @transform_2(%arg0: i32, %arg1: i32) -> (i32, i32) {
    %c0_i32 = arith.constant 0 : i32
    %c0_i32_0 = arith.constant 0 : i32
    return %c0_i32, %arg1 : i32, i32
  }
  func.func @transform_3(%arg0: i32, %arg1: i32) -> (i32, i32) {
    %c0_i32 = arith.constant 0 : i32
    return %arg0, %arg1 : i32, i32
  }
  func.func @transform_4(%arg0: i32, %arg1: i32) -> (i32, i32) {
    %c0_i32 = arith.constant 0 : i32
    return %arg0, %arg1 : i32, i32
  }
  func.func @transform_5(%arg0: i32, %arg1: i32) -> (i32, i32) {
    %c0_i32 = arith.constant 0 : i32
    return %arg0, %arg1 : i32, i32
  }
  func.func @transform_6(%arg0: i32, %arg1: i32) -> (i32, i32) {
    %c0_i32 = arith.constant 0 : i32
    return %arg0, %arg1 : i32, i32
  }
}

</mosaic_0001>

<bundles_post_ra>
// kernel: tpu_custom_call.1
= control target key start
LH: loop header
LB: loop body
LE: loop exit
PB: predicated region body
PF: predicated region fallthrough
CT: control target
= control target key end

     0   :  { %s1334_s0 = inlined_call_operand.hbm [shape: f32[32,32], index: 0, kind: input, shape index: {}]   ;;  %s1335_s1 = inlined_call_operand.vmem [shape: f32[1,32], index: 1, kind: input, shape index: {}]   ;;  %s1336_s2 = inlined_call_operand.hbm [shape: bf16[32,64], index: 2, kind: input, shape index: {}]   ;;  %s1337_s3 = inlined_call_operand.hbm [shape: f32[32,64], index: 3, kind: input, shape index: {}]   ;;  %s1338_s4 = inlined_call_operand.hbm [shape: f32[32,64], index: 4, kind: input, shape index: {}]   ;;  %s1339_s5 = inlined_call_operand.hbm [shape: f32[32,64], index: 5, kind: input, shape index: {}]   ;;  %s1340_s6 = inlined_call_operand.hbm [shape: f32[32,64], index: 6, kind: output, shape index: {}]  }
   0x1   :  { %1344 = sst [smem:[#allocation15_spill]] %s1334_s0 }
   0x2   :  { %1345 = sst [smem:[#allocation16_spill]] %s1337_s3 }
   0x3   :  { %1346 = sst [smem:[#allocation17_spill]] %s1338_s4 }
   0x4   :  { %11 = vsyncpa [#allocation3], 0 }
   0x5   :  { %13 = vsyncpa [#allocation3 + $0x1], 0 }
   0x6   :  { %14 = vsyncpa [#allocation6], 0 }
   0x7   :  { %15 = vsyncpa [#allocation4], 0 }
   0x8   :  { %17 = vsyncpa [#allocation4 + $0x1], 0  ;;  %s1106_s21 = smov 0   ;;  %s1108_s22 = smov 0  }
   0x9   :  { %s1110_s23 = smov 0   ;;  %s1112_s24 = smov 0  }
   0xa   :  { %s1114_s25 = smov 0   ;;  %s1116_s26 = smov 0  }
   0xb LB: > { %s35_s27 = sadd.s32 1, %s1051_s25  ;;  %s42_s28 = sadd.s32 1, %s1043_s23  ;;  %s1055_s26 = sphi %s1116_s26, %s23_s26   ;;  %s1051_s25 = sphi %s1114_s25, %s1366_s25   ;;  %s1047_s24 = sphi %s1112_s24, %s1365_s24   ;;  %s1043_s23 = sphi %s1110_s23, %s1364_s23   ;;  %s1039_s22 = sphi %s1108_s22, %s1363_s22   ;;  %s1035_s21 = sphi %s1106_s21, %s1362_s21  }
   0xc   : > { %p37_p0 = scmp.ge.s32.totalorder %s35_s27, 4  ;;  %p49_p1 = scmp.ne.s32.totalorder %s1043_s23, %s1039_s22 }
   0xd   : > { %p50_p2 = scmp.eq.s32.totalorder %s1055_s26, 0  ;;  %p765_p4 = scmp.lt.s32.totalorder %s1055_s26, 4 }
   0xe   : > { %s1368_s27 = smov (%p37_p0, %s35_s27), 0  ;;  %s256_s30 = sand.u32 1, %s1055_s26  }
   0xf   : > { %p51_p3 = por %p50_p2, %p49_p1  ;;  %s39_s29 = ssub.s32 %s1051_s25, %s1368_s27 }
  0x10   : > { %p40_p5 = scmp.eq.s32.totalorder %s39_s29, 0  ;;  %s258_s7 = sand.u32 1, %s1043_s23  }
  0x11   : > { %s1152_s8 = sshll.u32 %s1051_s25, 7  ;;  %s1157_s10 = sshll.u32 %s258_s7, 3 }
  0x12   : > { %s1155_s9 = scalar_select %p40_p5, %s1043_s23, %s42_s28  }
  0x13   : > { %s1347_s0 = sld [smem:[#allocation15_spill]]  ;;  %p1163_p6 = pnand %p765_p4, %p51_p3 }
  0x14   : > { %s260_s15 = scalar_lea.vmem [#allocation2], %s1157_s10  ;;  %s1168_s17 = scalar_lea.sflag [#allocation3], %s256_s30 }
  0x15   : > { %s267_s16 = sshll.u32 %s260_s15, 4  ;;  %p1341_p7 = pneg %p1163_p6  ;;  %s268_s16 = int_to_ptr.vmem [resolvable:$true] %s267_s16 }
  0x16   : > { %s842_s18 = scalar_lea.vmem %s268_s16, 128  ;;  %s1057_s19 = smov [#allocation2]  }
  0x17   : > { %p843_p8 = scmp.ne.s32.totalorder %s268_s16, %s842_s18  ;;  %s847_s20 = sshll.u32 %s1057_s19, 4  ;;  %s848_s20 = int_to_ptr.vmem [resolvable:$false] %s847_s20 }
  0x18   : > { %s849_s28 = scalar_lea.vmem %s848_s20, 256  ;;  %p850_p11 = scmp.lt.s32.totalorder %s268_s16, %s848_s20 }
  0x19   : > { %s265_s13 = scalar_lea.hbm %s1347_s0, %s1152_s8  ;;  %p845_p9 = pnand %p843_p8, %p1341_p7 }
  0x1a   : > { %p851_p12 = scmp.lt.s32.totalorder %s849_s28, %s842_s18 }
  0x1b   : > { %p846_p10 = pneg %p845_p9 }
  0x1c   : > { %p852_p13 = por %p851_p12, %p850_p11 }
  0x1e   : > { %p853_p0 = pnand %p852_p13, %p846_p10 }
  0x20   : > { %856 = shalt.err (!%p853_p0)
}
  0x21   : > { %750 = dma.hbm_to_vmem [thread:$0]  (!%p1163_p6), %s265_s13, 128, %s268_s16, %s1168_s17  }
  0x22   : > { %s1349_s3 = sld [smem:[#allocation16_spill]]  ;;  %s278_s11 = scalar_lea.vmem [#allocation7], %s1157_s10 }
  0x23   : > { %s286_s12 = sshll.u32 %s278_s11, 4  ;;  %s1058_s18 = smov [#allocation7]   ;;  %s287_s12 = int_to_ptr.vmem [resolvable:$true] %s286_s12 }
  0x24   : > { %s870_s15 = scalar_lea.vmem %s287_s12, 128  ;;  %s875_s19 = sshll.u32 %s1058_s18, 4  ;;  %s876_s19 = int_to_ptr.vmem [resolvable:$false] %s875_s19 }
  0x25   : > { %p871_p2 = scmp.ne.s32.totalorder %s287_s12, %s870_s15  ;;  %s877_s20 = scalar_lea.vmem %s876_s19, 256 }
  0x26   : > { %p878_p5 = scmp.lt.s32.totalorder %s287_s12, %s876_s19  ;;  %p879_p8 = scmp.lt.s32.totalorder %s877_s20, %s870_s15 }
  0x27   : > { %p873_p3 = pnand %p871_p2, %p1341_p7 }
  0x28   : > { %s284_s7 = scalar_lea.hbm %s1349_s3, %s1152_s8  ;;  %p880_p9 = por %p879_p8, %p878_p5 }
  0x29   : > { %p874_p4 = pneg %p873_p3 }
  0x2b   : > { %p881_p10 = pnand %p880_p9, %p874_p4 }
  0x2d   : > { %884 = shalt.err (!%p881_p10)
}
  0x2e   : > { %753 = dma.hbm_to_vmem [thread:$0]  (!%p1163_p6), %s284_s7, 128, %s287_s12, %s1168_s17  }
  0x2f   : > { %s1350_s4 = sld [smem:[#allocation17_spill]]  ;;  %s297_s29 = scalar_lea.vmem [#allocation8], %s1157_s10 }
  0x30   : > { %s305_s30 = sshll.u32 %s297_s29, 4  ;;  %s1059_s15 = smov [#allocation8]   ;;  %s306_s30 = int_to_ptr.vmem [resolvable:$true] %s305_s30 }
  0x31   : > { %s898_s11 = scalar_lea.vmem %s306_s30, 128  ;;  %s903_s18 = sshll.u32 %s1059_s15, 4  ;;  %s904_s18 = int_to_ptr.vmem [resolvable:$false] %s903_s18 }
  0x32   : > { %p899_p11 = scmp.ne.s32.totalorder %s306_s30, %s898_s11  ;;  %s905_s19 = scalar_lea.vmem %s904_s18, 256 }
  0x33   : > { %p906_p0 = scmp.lt.s32.totalorder %s306_s30, %s904_s18  ;;  %p907_p2 = scmp.lt.s32.totalorder %s905_s19, %s898_s11 }
  0x34   : > { %p901_p12 = pnand %p899_p11, %p1341_p7 }
  0x35   : > { %s303_s28 = scalar_lea.hbm %s1350_s4, %s1152_s8  ;;  %p908_p3 = por %p907_p2, %p906_p0 }
  0x36   : > { %p902_p13 = pneg %p901_p12 }
  0x38   : > { %p909_p4 = pnand %p908_p3, %p902_p13 }
  0x3a   : > { %912 = shalt.err (!%p909_p4)
}
  0x3b   : > { %756 = dma.hbm_to_vmem [thread:$0]  (!%p1163_p6), %s303_s28, 128, %s306_s30, %s1168_s17  }
  0x3c   : > { %s1201_s7 = sadd.s32 4294967295, %s1055_s26   ;;  %s691_s12 = sadd.s32 4294967294, %s1055_s26  }
  0x3d   : > { %p55_p5 = scmp.ne.s32.totalorder %s1039_s22, %s1035_s21  ;;  %p1342_p8 = scmp.eq.s32.totalorder %s1201_s7, 0 }
  0x3e   : > { %p212_p9 = scmp.eq.s32.totalorder %s1201_s7, 3  ;;  %p218_p10 = scmp.eq.s32.totalorder %s691_s12, 3 }
  0x3f   : > { %p692_p11 = scmp.ge.s32.totalorder %s1055_s26, 1  ;;  %p1211_p12 = por %p1342_p8, %p55_p5 }
  0x40   : > { %p1218_p13 = por %p212_p9, %p49_p1  ;;  %p1222_p0 = por %p218_p10, %p55_p5 }
  0x41   : > { %p225_p2 = scmp.lt.s32.totalorder %s1055_s26, 5  ;;  %s1060_s29 = smov [#allocation5]  }
  0x42   : > { %s1352_s13 = scalar_select %p1218_p13, 1, 0 }
  0x43   : > { %s1353_s16 = scalar_select %p1222_p0, 1, 0 }
  0x44   : > { %p1227_p3 = pnand %p692_p11, %p225_p2  ;;  %s242_s30 = sshll.u32 %s1060_s29, 4  ;;  %s243_s30 = int_to_ptr.vmem [resolvable:$true] %s242_s30 }
  0x45   : > { %s316_s15 = scalar_lea.vmem [#allocation9], %s1157_s10  ;;  %s924_s3 = scalar_lea.vmem %s243_s30, 256 }
  0x46   : > { %p743_p4 = pneg %p1227_p3  ;;  %s324_s18 = sshll.u32 %s316_s15, 4  ;;  %s325_s18 = int_to_ptr.vmem [resolvable:$true] %s324_s18 }
  0x47   : > { %p925_p9 = scmp.ne.s32.totalorder %s243_s30, %s924_s3  ;;  %p932_p2 = scmp.lt.s32.totalorder %s243_s30, %s243_s30 }
  0x48   : > { %p1235_p1 = pnand %p743_p4, %p1342_p8  ;;  %p933_p7 = scmp.lt.s32.totalorder %s924_s3, %s924_s3 }
  0x4a   : > { %p915_p5 = pneg %p1235_p1  ;;  %p934_p4 = por %p933_p7, %p932_p2 }
  0x4c   : > { %p927_p10 = pnand %p925_p9, %p915_p5 }
  0x4e   : > { %p928_p11 = pneg %p927_p10 }
  0x50   : > { %p935_p8 = pnand %p934_p4, %p928_p11 }
  0x52   : > { %938 = shalt.err (!%p935_p8)
}
  0x53   : > { %s1061_s29 = smov 64   ;;  %s1062_s10 = smov 4  }
  0x54   : > { %746 = dma.hbm_to_vmem [thread:$0]  (!%p1235_p1), %s1336_s2, 256, %s243_s30, [#allocation6], %s1061_s29, %s1061_s29, %s1062_s10  }
  0x55   : > { %s952_s12 = scalar_lea.vmem %s325_s18, 128  ;;  %p1356_p13 = pneg %p1163_p6 }
  0x56   : > { %p953_p0 = scmp.ne.s32.totalorder %s325_s18, %s952_s12  ;;  %s1063_s0 = smov [#allocation9]  }
  0x57   : > { %s957_s3 = sshll.u32 %s1063_s0, 4  ;;  %s958_s3 = int_to_ptr.vmem [resolvable:$false] %s957_s3 }
  0x58   : > { %p955_p5 = pnand %p953_p0, %p1356_p13  ;;  %s959_s4 = scalar_lea.vmem %s958_s3, 256 }
  0x59   : > { %p960_p7 = scmp.lt.s32.totalorder %s325_s18, %s958_s3  ;;  %p961_p8 = scmp.lt.s32.totalorder %s959_s4, %s952_s12 }
  0x5a   : > { %p956_p9 = pneg %p955_p5 }
  0x5b   : > { %p962_p10 = por %p961_p8, %p960_p7 }
  0x5d   : > { %p963_p11 = pnand %p962_p10, %p956_p9 }
  0x5f   : > { %966 = shalt.err (!%p963_p11)
}
  0x60   : > { %s1357_s29 = scalar_lea.hbm %s1339_s5, %s1152_s8  ;;  %333 = sbr.rel (%p1227_p3) target bundleno = 608 (0x260), region = 44 }
  0x61   : > { %759 = dma.hbm_to_vmem [thread:$0]  (!%p1163_p6), %s1357_s29, 128, %s325_s18, %s1168_s17  }
  0x62   : > { %s335_s0 = sand.u32 (!%p1227_p3), 1, %s1201_s7   ;;  %s337_s4 = sand.u32 (!%p1227_p3), 1, %s1039_s22  }
  0x63   : > { %s1268_s10 = sshll.u32 (!%p1227_p3), %s337_s4, 3  ;;  %s336_s14 = scalar_lea.sflag (!%p1227_p3), [#allocation3], %s335_s0 }
  0x64   : > { %s339_s15 = scalar_lea.vmem (!%p1227_p3), [#allocation2], %s1268_s10 }
  0x65   : > { %1018 = dma.done.wait (%p1211_p12), %s336_s14, 128  }
  0x66   : > { %1020 = vsyncadd (%p1211_p12), %s336_s14, 4294967168  ;;  %p1358_p6 = scmp.eq.s32.totalorder %s1201_s7, 0 }
  0x68   : > { %1022 = dma.done.wait (%p1358_p6), [#allocation6], 256   ;;  %p1359_p13 = pmov %p1358_p6 }
  0x69   : > { %s352_s8 = scalar_lea.vmem [#allocation7], %s1268_s10 }
  0x6a   : > { %1024 = vsyncadd (%p1359_p13), [#allocation6], 4294967040 }
  0x6b   : > { %1026 = dma.done.wait (%p1211_p12), %s336_s14, 384  }
  0x6c   : > { %1028 = vsyncadd (%p1211_p12), %s336_s14, 4294966912  ;;  %v415_v0 = vld [vmem:[%s339_s15] sm:$0xff]  ;;  %vm418_vm0 = vcmask 261120   ;;  %v825_v3 = vld [vmem:[#allocation5 + $0x8] sm:$0xff]   ;;  %v1064_v4 = vmov 0.0   ;;  %vm1065_vm1 = vmmov 0  }
  0x6d   : > { %v417_v1 = vmul.f32 %v415_v0, %v415_v0  ;;  %721 = vmatprep.subr.bf16.mxu0 %v1064_v4  ;;  %725 = vmatprep.mubr.msk.bf16.mxu0 %vm1065_vm1, %v1064_v4  ;;  %v826_v5 = vld [vmem:[#allocation5] sm:$0xff]   ;;  %v710_v10 = vld [vmem:[%s1335_s1] ss:$0 sm:$0xff]  ;;  %s1066_s20 = smov 4   ;;  %s1067_s28 = smov 68   ;;  %vm501_vm2 = vcmask 31744  }
  0x6e   : > { %722 = vmatpush3.bf16.msra.mxu0 %v825_v3  ;;  %s1068_s18 = smov 124   ;;  %s1069_s19 = smov 60   ;;  %v511_v23 = vld [vmem:[%s352_s8] sm:$0xff]  ;;  %vm509_vm3 = vcmask 490496   ;;  %vm519_vm4 = vcmask 523264  }
  0x6f   : > { %v419_v2 = vsel %vm418_vm0, %v417_v1, 0.0  ;;  %723 = vmatprep.subr.bf16.mxu0 %v1064_v4  ;;  %s361_s12 = scalar_lea.vmem [#allocation8], %s1268_s10  ;;  %s370_s3 = scalar_lea.vmem [#allocation9], %s1268_s10 }
  0x70   : > { %420 = vadd.xlane.f32.xlu0 %v419_v2  ;;  %v513_v20 = vld [vmem:[%s361_s12] sm:$0xff]  ;;  %v516_v25 = vld [vmem:[%s370_s3] sm:$0xff]  ;;  %s715_s11 = sshll.u32 %s1047_s24, 7  ;;  %s413_s30 = scalar_lea.vmem [#allocation10], %s1268_s10 }
  0x71   : > { %s536_s29 = sshll.u32 %s413_s30, 4  ;;  %s534_s15 = scalar_lea.hbm %s1340_s6, %s715_s11  ;;  %s537_s29 = int_to_ptr.vmem [resolvable:$true] %s536_s29 }
  0x72   : > { %724 = vmatpush3.bf16.msra.mxu0 %v826_v5  ;;  %s522_s8 = scalar_lea.sflag [#allocation4], %s337_s4  ;;  %s967_s17 = scalar_lea.vmem %s537_s29, 128 }
  0x73   : > { %p968_p12 = scmp.ne.s32.totalorder %s537_s29, %s967_s17  ;;  %p1360_p0 = scmp.ne.s32.totalorder %s1352_s13, 0 }
  0x74   : > { %s1070_s24 = smov [#allocation10]  }
  0x75   : > { %p969_p3 = pnand %p968_p12, %p1360_p0  ;;  %s971_s10 = sshll.u32 %s1070_s24, 4  ;;  %s972_s10 = int_to_ptr.vmem [resolvable:$false] %s971_s10 }
  0x76   : > { %s973_s7 = scalar_lea.vmem %s972_s10, 256  ;;  %p974_p2 = scmp.lt.s32.totalorder %s537_s29, %s972_s10 }
  0x77   : > { %p970_p1 = pneg %p969_p3  ;;  %p975_p4 = scmp.lt.s32.totalorder %s973_s7, %s967_s17 }
  0x79   : > { %p976_p5 = por %p975_p4, %p974_p2 }
  0x7b   : > { %p977_p9 = pnand %p976_p5, %p970_p1 }
  0xf9   : > { %v421_v6 = vpop.xlane.xlu0 %420 }
  0xfa   : > { %v423_v7 = vmul.f32 0.03125, %v421_v6 }
  0xfc   : > { %v424_v8 = vadd.f32 1e-06, %v423_v7 }
  0xfe   : > { %827 = vrsqrt.f32 %v424_v8 }
 0x10b   : > { %v828_v9 = vpop.eup %827 }
 0x10c   : > { %v426_v11 = vmul.f32 %v828_v9, %v415_v0 }
 0x10e   : > { %v433_v12 = vmul.f32 %v710_v10, %v426_v11 }
 0x110   : > { %v434_v13 = vpack.c.bf16 %v433_v12, %v433_v12 }
 0x112   : > { %726 = vmatmul.mubr.msk.bf16.vlgmr.msra.gmra.mxu0 %vm418_vm0, %v434_v13 }
 0x1d2   : > { %v488_v14 = vpop.f32.mrf.mxu0 }
 0x1d3   : > { %498 = vrot.lane.b32.xlu1 %v488_v14, %s1066_s20  ;;  %495 = vrot.lane.b32.xlu0 %v488_v14, %s1067_s28  ;;  %v512_v26 = vmul.f32 %v511_v23, %v488_v14 }
 0x1d4   : > { %v727_v15 = vpop.f32.mrf.mxu0 }
 0x1d6   : > { %v491_v16 = vpop.f32.mrf.mxu0 }
 0x1d7   : > { %503 = vrot.lane.b32.xlu1 %v488_v14, %s1068_s18 }
 0x1d8   : > { %v728_v17 = vpop.f32.mrf.mxu0 }
 0x1db   : > { %506 = vrot.lane.b32.xlu1 %v488_v14, %s1069_s19 }
 0x245   : > { %v499_v18 = vpop.permute.xlu1 %498  ;;  %v496_v19 = vpop.permute.xlu0 %495 }
 0x246   : > { %v502_v21 = vsel %vm501_vm2, %v496_v19, %v499_v18 }
 0x247   : > { %v514_v24 = vmul.f32 %v513_v20, %v502_v21 }
 0x249   : > { %v504_v22 = vpop.permute.xlu1 %503  ;;  %v515_v29 = vadd.f32 %v514_v24, %v512_v26 }
 0x24d   : > { %v507_v27 = vpop.permute.xlu1 %506 }
 0x24e   : > { %v510_v28 = vsel %vm509_vm3, %v504_v22, %v507_v27 }
 0x24f   : > { %v517_v30 = vmul.f32 %v516_v25, %v510_v28 }
 0x251   : > { %v518_v31 = vadd.f32 %v517_v30, %v515_v29 }
 0x253   : > { %520 = vst.msk [vmem:[%s413_s30] sm:$0xff] %vm519_vm4, %v518_v31 }
 0x254   : > { %980 = shalt.err (!%p977_p9)
}
 0x255   : > { %s981_s20 = scalar_lea.hbm %s534_s15, 128  ;;  %s985_s18 = scalar_lea.hbm %s1340_s6, 512 }
 0x256   : > { %p982_p7 = scmp.ne.s32.totalorder %s534_s15, %s981_s20  ;;  %p986_p11 = scmp.lt.s32.totalorder %s534_s15, %s1340_s6 }
 0x257   : > { %p987_p6 = scmp.lt.s32.totalorder %s985_s18, %s981_s20 }
 0x258   : > { %p983_p8 = pnand %p982_p7, %p1360_p0 }
 0x259   : > { %p988_p13 = por %p987_p6, %p986_p11 }
 0x25a   : > { %p984_p10 = pneg %p983_p8 }
 0x25c   : > { %p989_p12 = pnand %p988_p13, %p984_p10 }
 0x25e   : > { %992 = shalt.err (!%p989_p12)
}
 0x25f   : > { %741 = dma.vmem_to_hbm [thread:$0]  (%p1360_p0), %s537_s29, 128, %s534_s15, %s522_s8  }
 0x260 PF: > { %p767_p3 = scmp.ge.s32.totalorder %s1055_s26, 2  ;;  %s548_s3 = sand.u32 1, %s1035_s21  }
 0x261   : > { %p1361_p1 = scmp.ne.s32.totalorder %s1353_s16, 0  ;;  %s549_s11 = scalar_lea.sflag [#allocation4], %s548_s3 }
 0x263   : > { %p761_p2 = pnand %p767_p3, %p1361_p1 }
 0x265   : > { %p762_p4 = pneg %p761_p2 }
 0x267   : > { %1030 = dma.done.wait (%p762_p4), %s549_s11, 128  }
 0x268   : > { %1032 = vsyncadd (%p762_p4), %s549_s11, 4294967168  ;;  %s23_s26 = sadd.s32 1, %s1055_s26   ;;  %s1362_s21 = smov %s1039_s22 }
 0x269   : > { %p20_p5 = scmp.ge.s32.totalorder %s23_s26, 6   ;;  %s1363_s22 = smov %s1043_s23 }
 0x26a   : > { %s1364_s23 = smov %s1155_s9  ;;  %s1365_s24 = smov %s1051_s25 }
 0x26b   : > { %s1366_s25 = smov %s1368_s27  ;;  %22 = sbr.rel (!%p20_p5) target bundleno = 11 (0xb), region = 127 }
 0x270   :  { %554 = vsyncpa [#allocation3], 1 }
 0x271   :  { %556 = vsyncpa [#allocation3 + $0x1], 1 }
 0x272   :  { %557 = vsyncpa [#allocation6], 1 }
 0x273   :  { %558 = vsyncpa [#allocation4], 1 }
 0x274   :  { %560 = vsyncpa [#allocation4 + $0x1], 1 }

</bundles_post_ra>
